<compile_context>
chip_gen: v7x
topology: tpu7x:2x2x1
jax: 0.10.0
libtpu: 0.0.40
codegen_flags: <defaults>
</compile_context>

<pallas_src>
import jax
import jax.numpy as jnp
from jax.experimental import pallas as pl
from jax.experimental.pallas import tpu as pltpu


def _round_up(x, m):
    return ((x + m - 1) // m) * m


def freq_kernel(col_ref, summed_ref, iota_ref, out_ref):
    # col_ref:    (1, TILE_N)   int32   -- indices[:, 1] tile, lane-dense
    # summed_ref: (R_pad, 1)    float32 -- pre-reduced table, resident
    # iota_ref:   (R_pad, 1)    int32   -- row ids, resident (no per-tile iota)
    # out_ref:    (1, TILE_N)   float32 -- lane-dense output tile
    cols = col_ref[...]                              # (1, TILE_N)
    summed = summed_ref[...]                         # (R_pad, 1)
    row_ids = iota_ref[...]                          # (R_pad, 1)

    # Select the pre-reduced value where the row id matches the gather index;
    # broadcast happens inside the compare/select (VPU), reduce goes to XLU.
    sel = jnp.where(row_ids == cols, summed, 0.0)    # (R_pad, TILE_N)
    out_ref[...] = jnp.sum(sel, axis=0, keepdims=True).astype(out_ref.dtype)


def freq_forward(train_table, indices, *, tile_n=4096):
    """Pallas equivalent of Freq(train_table).forward(indices)."""
    r, c = train_table.shape
    n = indices.shape[0]

    r_pad = _round_up(r, 8)

    # Cap the tile so the (R_pad, TILE_N) select temporary stays small
    # (<= 8 MiB), leaving plenty of headroom under v7x's 32 MiB scoped VMEM
    # even with double-buffered I/O tiles.
    tile_cap = max(128, ((8 * 1024 * 1024) // (4 * r_pad)) // 128 * 128)
    tile_n = min(tile_n, tile_cap)

    n128 = _round_up(max(n, 1), 128)
    tile_n = min(tile_n, n128)
    # Keep >= 2 grid steps when the problem is big enough, so the parallel
    # N axis can feed both v7x TensorCores (harmless on v5e/v6e).
    if n128 >= 256 and n128 // tile_n < 2:
        tile_n = _round_up(pl.cdiv(n128, 2), 128)
    n_pad = _round_up(n128, tile_n)

    # One-time "module init" + layout plumbing in the wrapper:
    #   pre-reduce over C, pad rows to a sublane multiple, pack the gather
    #   indices into a single lane-dense (1, N_pad) int32 slab.
    summed = jnp.sum(train_table, axis=1)                                  # (R,)
    summed_col = (jnp.zeros((r_pad, 1), train_table.dtype)
                  .at[:r, 0].set(summed))                                  # (R_pad, 1)
    row_iota = jnp.arange(r_pad, dtype=jnp.int32).reshape(r_pad, 1)        # (R_pad, 1)
    cols = (jnp.zeros((1, n_pad), jnp.int32)
            .at[0, :n].set(indices[:, 1].astype(jnp.int32)))               # (1, N_pad)

    grid = (n_pad // tile_n,)
    out = pl.pallas_call(
        freq_kernel,
        out_shape=jax.ShapeDtypeStruct((1, n_pad), train_table.dtype),
        grid=grid,
        in_specs=[
            pl.BlockSpec((1, tile_n), lambda i: (0, i)),    # index tile
            pl.BlockSpec((r_pad, 1), lambda i: (0, 0)),     # summed table, resident
            pl.BlockSpec((r_pad, 1), lambda i: (0, 0)),     # row iota, resident
        ],
        out_specs=pl.BlockSpec((1, tile_n), lambda i: (0, i)),
        compiler_params=pltpu.CompilerParams(
            dimension_semantics=("parallel",),
            vmem_limit_bytes=32 * 1024 * 1024,
        ),
    )(cols, summed_col, row_iota)

    return out[0, :n]   # (N,), same as the PyTorch module


if __name__ == "__main__":
    key = jax.random.PRNGKey(0)
    k_table, k_row, k_col = jax.random.split(key, 3)

    R, C, N = 16, 16, 1200   # small table; N big enough to exercise the grid

    train_table = jax.random.normal(k_table, (R, C), dtype=jnp.float32)
    row_idx = jax.random.randint(k_row, (N,), 0, R, dtype=jnp.int32)  # unused by forward
    col_idx = jax.random.randint(k_col, (N,), 0, R, dtype=jnp.int32)  # indexes summed table
    indices = jnp.stack([row_idx, col_idx], axis=1)                   # (N, 2)

    out = jax.block_until_ready(freq_forward(train_table, indices))

    # Reference: exactly the PyTorch module's math in plain JAX.
    ref = jnp.sum(train_table, axis=1)[indices[:, 1]]
    assert out.shape == (N,)
    assert jnp.allclose(out, ref, atol=1e-4, rtol=1e-4), float(
        jnp.max(jnp.abs(out - ref)))

    print("KERNEL_OK")
</pallas_src>

<mosaic_0001>
module attributes {stable_mosaic.version = 11 : i64} {
  func.func @freq_kernel(%arg0: i32, %arg1: memref<1x640xi32, #tpu.memory_space<vmem>>, %arg2: memref<16x1xf32, #tpu.memory_space<vmem>>, %arg3: memref<16x1xi32, #tpu.memory_space<vmem>>, %arg4: memref<1x640xf32, #tpu.memory_space<vmem>>) attributes {dimension_semantics = [#tpu.dimension_semantics<parallel>], iteration_bounds = array<i64: 2>, scalar_prefetch = 0 : i64, scratch_operands = 0 : i64, tpu.core_type = #tpu.core_type<tc>, window_params = [{transform_indices = @transform_0, window_bounds = array<i64: 1, 640>}, {pipeline_mode = #tpu.pipeline_mode<synchronous>, transform_indices = @transform_1, window_bounds = array<i64: 16, 1>}, {pipeline_mode = #tpu.pipeline_mode<synchronous>, transform_indices = @transform_2, window_bounds = array<i64: 16, 1>}, {transform_indices = @transform_3, window_bounds = array<i64: 1, 640>}]} {
    %c0 = arith.constant 0 : index
    %c0_0 = arith.constant 0 : index
    %0 = vector.load %arg1[%c0, %c0_0] : memref<1x640xi32, #tpu.memory_space<vmem>>, vector<1x640xi32>
    %c0_1 = arith.constant 0 : index
    %c0_2 = arith.constant 0 : index
    %1 = vector.load %arg2[%c0_1, %c0_2] : memref<16x1xf32, #tpu.memory_space<vmem>>, vector<16x1xf32>
    %c0_3 = arith.constant 0 : index
    %c0_4 = arith.constant 0 : index
    %2 = vector.load %arg3[%c0_3, %c0_4] : memref<16x1xi32, #tpu.memory_space<vmem>>, vector<16x1xi32>
    %3 = vector.broadcast %2 : vector<16x1xi32> to vector<16x640xi32>
    %4 = vector.broadcast %0 : vector<1x640xi32> to vector<16x640xi32>
    %5 = arith.cmpi eq, %3, %4 : vector<16x640xi32>
    %cst = arith.constant 0.000000e+00 : f32
    %6 = vector.shape_cast %1 : vector<16x1xf32> to vector<16x1xf32>
    %7 = vector.broadcast %6 : vector<16x1xf32> to vector<16x640xf32>
    %8 = vector.broadcast %cst : f32 to vector<16x640xf32>
    %9 = arith.select %5, %7, %8 : vector<16x640xi1>, vector<16x640xf32>
    %cst_5 = arith.constant dense<0.000000e+00> : vector<640xf32>
    %10 = vector.multi_reduction <add>, %9, %cst_5 [0] : vector<16x640xf32> to vector<640xf32>
    %11 = vector.shape_cast %10 : vector<640xf32> to vector<1x640xf32>
    %c0_6 = arith.constant 0 : index
    %c0_7 = arith.constant 0 : index
    %12 = vector.load %arg4[%c0_6, %c0_7] : memref<1x640xf32, #tpu.memory_space<vmem>>, vector<1x640xf32>
    tpu.vector_store %arg4[%c0_6, %c0_7], %11 {strides = array<i32>} : memref<1x640xf32, #tpu.memory_space<vmem>>, vector<1x640xf32>,
    return
  }
  func.func @transform_0(%arg0: i32) -> (i32, i32) {
    %c0_i32 = arith.constant 0 : i32
    %c0_i32_0 = arith.constant 0 : i32
    return %c0_i32, %arg0 : i32, i32
  }
  func.func @transform_1(%arg0: i32) -> (i32, i32) {
    %c0_i32 = arith.constant 0 : i32
    %c0_i32_0 = arith.constant 0 : i32
    %c0_i32_1 = arith.constant 0 : i32
    return %c0_i32, %c0_i32_0 : i32, i32
  }
  func.func @transform_2(%arg0: i32) -> (i32, i32) {
    %c0_i32 = arith.constant 0 : i32
    %c0_i32_0 = arith.constant 0 : i32
    %c0_i32_1 = arith.constant 0 : i32
    return %c0_i32, %c0_i32_0 : i32, i32
  }
  func.func @transform_3(%arg0: i32) -> (i32, i32) {
    %c0_i32 = arith.constant 0 : i32
    %c0_i32_0 = arith.constant 0 : i32
    return %c0_i32, %arg0 : i32, i32
  }
}

</mosaic_0001>

<bundles_post_ra>
// kernel: tpu_custom_call.1
= control target key start
LH: loop header
LB: loop body
LE: loop exit
PB: predicated region body
PF: predicated region fallthrough
CT: control target
= control target key end

     0   :  { %8 = vsyncpa [#allocation3], 0  ;;  %s646_s0 = inlined_call_operand.vmem [shape: s32[1,1280], index: 0, kind: input, shape index: {}]   ;;  %s647_s1 = inlined_call_operand.vmem [shape: f32[16,1], index: 1, kind: input, shape index: {}]   ;;  %s648_s2 = inlined_call_operand.vmem [shape: s32[16,1], index: 2, kind: input, shape index: {}]   ;;  %s649_s3 = inlined_call_operand.hbm [shape: f32[1,1280], index: 3, kind: output, shape index: {}]  }
   0x1   :  { %10 = vsyncpa [#allocation3 + $0x1], 0  ;;  %s525_s12 = smov 0   ;;  %s527_s13 = smov 0  }
   0x2   :  { %s529_s14 = smov 0   ;;  %s531_s15 = smov 0  }
   0x3 LB: > { %s546_s16 = sadd.s32 4294967295, %s500_s15   ;;  %s386_s17 = sadd.s32 4294967294, %s500_s15   ;;  %s500_s15 = sphi %s531_s15, %s655_s15   ;;  %s496_s14 = sphi %s529_s14, %s654_s14   ;;  %s492_s13 = sphi %s527_s13, %s653_s13   ;;  %s488_s12 = sphi %s525_s12, %s652_s12  }
   0x4   : > { %s550_s18 = sadd.s32 1, %s500_s15   ;;  %s91_s19 = sadd.s32 1, %s496_s14 }
   0x5   : > { %s88_s20 = ssub.s32 %s500_s15, %s550_s18  ;;  %p101_p0 = scmp.ne.s32.totalorder %s496_s14, %s492_s13 }
   0x6   : > { %p89_p1 = scmp.eq.s32.totalorder %s88_s20, 0  ;;  %p102_p2 = scmp.eq.s32.totalorder %s546_s16, 1 }
   0x7   : > { %p107_p3 = scmp.ne.s32.totalorder %s492_s13, %s488_s12  ;;  %p108_p4 = scmp.eq.s32.totalorder %s386_s17, 1 }
   0x8   : > { %s561_s21 = scalar_select %p89_p1, %s496_s14, %s91_s19  }
   0x9   : > { %p563_p5 = por %p102_p2, %p101_p0  ;;  %p567_p6 = por %p108_p4, %p107_p3 }
   0xa   : > { %p389_p7 = scmp.ge.s32.totalorder %s500_s15, 1  ;;  %p140_p8 = scmp.lt.s32.totalorder %s500_s15, 3 }
   0xc   : > { %p141_p9 = pnand %p389_p7, %p140_p8 }
   0xd   : > { %v172_v0 = vld [vmem:[%s648_s2] sm:$0xff] (!%p141_p9)  ;;  %v502_v2 = vmov (!%p141_p9), 0   ;;  %v173_v3 = vld [vmem:[%s648_s2 + $0x8] sm:$0xff] (!%p141_p9)  ;;  %s163_s5 = smul.u32 (!%p141_p9), 5, %s546_s16  ;;  %v180_v5 = vlaneseq (!%p141_p9)  ;;  %v503_v47 = vmov (!%p141_p9), 1966171168  }
   0xe   : > { %144 = sbr.rel (%p141_p9) target bundleno = 188 (0xbc), region = 32  ;;  %v170_v1 = vld [vmem:[%s647_s1] sm:$0xff] (!%p141_p9)  ;;  %437 = vset.pattern.permute.xlu1 (!%p141_p9), %v502_v2  ;;  %436 = vset.pattern.permute.xlu0 (!%p141_p9), %v502_v2  ;;  %v171_v4 = vld [vmem:[%s647_s1 + $0x8] sm:$0xff] (!%p141_p9)  ;;  %v273_v48 = vunpack.c.l.s4 (!%p141_p9), %v503_v47  ;;  %s160_s9 = sand.u32 (!%p141_p9), 1, %s492_s13  }
   0xf   : > { %175 = vperm.xlu0 (!%p141_p9), %436, %v172_v0   ;;  %212 = vperm.xlu1 (!%p141_p9), %437, %v170_v1   ;;  %p164_p10 = scmp.lt.s32.totalorder (!%p141_p9), %s163_s5, 9  ;;  %v587_v6 = vshrl.u32 (!%p141_p9), %v180_v5, 7  ;;  %s394_s10 = smul.u32 (!%p141_p9), 5, %s160_s9  ;;  %vm312_vm10 = vcmp.lt.s32.totalorder (!%p141_p9), %v180_v5, 640 }
  0x10   : > { %v274_v59 = vunpack.c.0.s8 (!%p141_p9), %v273_v48  ;;  %s393_s11 = smul.u32 (!%p141_p9), 80, %s546_s16  ;;  %s316_s26 = scalar_lea.sflag (!%p141_p9), [#allocation3], %s160_s9 }
  0x11   : > { %v182_v7 = vsub.s32 (!%p141_p9), 0, %v587_v6  ;;  %v186_v8 = vsub.s32 (!%p141_p9), 1, %v587_v6  ;;  %v190_v9 = vsub.s32 (!%p141_p9), 2, %v587_v6  ;;  %v194_v10 = vsub.s32 (!%p141_p9), 3, %v587_v6  ;;  %s162_s17 = scalar_lea.vmem (!%p141_p9), [#allocation2], %s394_s10  ;;  %s504_s27 = smov (!%p141_p9), [#allocation2]  }
  0x12   : > { %v198_v11 = vsub.s32 (!%p141_p9), 4, %v587_v6  ;;  %s330_s19 = sshll.u32 (!%p141_p9), %s162_s17, 4  ;;  %s604_s25 = scalar_lea.hbm (!%p141_p9), %s649_s3, %s393_s11  ;;  %s606_s19 = int_to_ptr.vmem [resolvable:$true] %s330_s19 }
  0x13   : > { %178 = vperm.xlu0 (!%p141_p9), %436, %v173_v3   ;;  %217 = vperm.xlu1 (!%p141_p9), %437, %v171_v4   ;;  %s438_s16 = scalar_lea.vmem (!%p141_p9), %s606_s19, 80  ;;  %s442_s28 = sshll.u32 (!%p141_p9), %s504_s27, 4  ;;  %s443_s28 = int_to_ptr.vmem [resolvable:$false] %s442_s28 }
  0x14   : > { %p439_p11 = scmp.ne.s32.totalorder (!%p141_p9), %s606_s19, %s438_s16  ;;  %s444_s29 = scalar_lea.vmem (!%p141_p9), %s443_s28, 160 }
  0x15   : > { %s657_s5 = smov (!%p164_p10, %s163_s5), 9  ;;  %p445_p0 = scmp.lt.s32.totalorder %s606_s19, %s443_s28 }
  0x16   : > { %s166_s8 = scalar_lea.vmem %s646_s0, %s657_s5  ;;  %p440_p12 = pnand %p439_p11, %p563_p5 }
  0x17   : > { %v169_v12 = vld [vmem:[%s166_s8] sm:$0x1f]  ;;  %p446_p1 = scmp.lt.s32.totalorder %s444_s29, %s438_s16 }
  0x18   : > { %v183_v13 = vrot.slane %v169_v12, %v182_v7  ;;  %v187_v14 = vrot.slane %v169_v12, %v186_v8  ;;  %v191_v15 = vrot.slane %v169_v12, %v190_v9  ;;  %v195_v16 = vrot.slane %v169_v12, %v194_v10  ;;  %p441_p13 = pneg %p440_p12 }
  0x19   : > { %v199_v17 = vrot.slane %v169_v12, %v198_v11  ;;  %v277_v8 = vsub.s32 %v274_v59, %v587_v6  ;;  %p447_p2 = por %p446_p1, %p445_p0 }
  0x1b   : > { %p448_p3 = pnand %p447_p2, %p441_p13 }
  0x8e   : > { %v176_v18 = vpop.permute.xlu0 %175  ;;  %v213_v19 = vpop.permute.xlu1 %212 }
  0x8f   : > { %vm200_vm0 = vcmp.eq.s32.totalorder %v176_v18, %v183_v13  ;;  %vm201_vm1 = vcmp.eq.s32.totalorder %v176_v18, %v187_v14  ;;  %vm202_vm2 = vcmp.eq.s32.totalorder %v176_v18, %v191_v15  ;;  %vm203_vm3 = vcmp.eq.s32.totalorder %v176_v18, %v195_v16 }
  0x90   : > { %vm204_vm4 = vcmp.eq.s32.totalorder %v176_v18, %v199_v17  ;;  %v220_v20 = vsel %vm200_vm0, %v213_v19, 0.0  ;;  %v221_v23 = vsel %vm201_vm1, %v213_v19, 0.0  ;;  %v222_v24 = vsel %vm202_vm2, %v213_v19, 0.0 }
  0x91   : > { %v223_v25 = vsel %vm203_vm3, %v213_v19, 0.0  ;;  %v224_v26 = vsel %vm204_vm4, %v213_v19, 0.0 }
  0x92   : > { %v179_v21 = vpop.permute.xlu0 %178  ;;  %v218_v22 = vpop.permute.xlu1 %217 }
  0x93   : > { %vm205_vm5 = vcmp.eq.s32.totalorder %v179_v21, %v183_v13  ;;  %vm206_vm6 = vcmp.eq.s32.totalorder %v179_v21, %v187_v14  ;;  %vm207_vm7 = vcmp.eq.s32.totalorder %v179_v21, %v191_v15  ;;  %vm208_vm8 = vcmp.eq.s32.totalorder %v179_v21, %v195_v16 }
  0x94   : > { %vm209_vm9 = vcmp.eq.s32.totalorder %v179_v21, %v199_v17  ;;  %v225_v27 = vsel %vm205_vm5, %v218_v22, 0.0  ;;  %v226_v28 = vsel %vm206_vm6, %v218_v22, 0.0  ;;  %v227_v29 = vsel %vm207_vm7, %v218_v22, 0.0 }
  0x95   : > { %v228_v30 = vsel %vm208_vm8, %v218_v22, 0.0  ;;  %v229_v31 = vsel %vm209_vm9, %v218_v22, 0.0  ;;  %v230_v32 = vadd.f32 %v225_v27, %v220_v20  ;;  %v237_v33 = vadd.f32 %v226_v28, %v221_v23 }
  0x96   : > { %v244_v34 = vadd.f32 %v227_v29, %v222_v24  ;;  %v251_v35 = vadd.f32 %v228_v30, %v223_v25  ;;  %v258_v36 = vadd.f32 %v229_v31, %v224_v26 }
  0x97   : > { %v231_v37 = vrot.slane %v230_v32, 4  ;;  %v238_v38 = vrot.slane %v237_v33, 4 }
  0x98   : > { %v245_v39 = vrot.slane %v244_v34, 4  ;;  %v252_v40 = vrot.slane %v251_v35, 4  ;;  %v259_v41 = vrot.slane %v258_v36, 4 }
  0x99   : > { %v232_v42 = vadd.f32 %v231_v37, %v230_v32  ;;  %v239_v43 = vadd.f32 %v238_v38, %v237_v33 }
  0x9a   : > { %v246_v44 = vadd.f32 %v245_v39, %v244_v34  ;;  %v253_v45 = vadd.f32 %v252_v40, %v251_v35  ;;  %v260_v46 = vadd.f32 %v259_v41, %v258_v36 }
  0x9b   : > { %v233_v49 = vrot.slane %v232_v42, 2  ;;  %v240_v50 = vrot.slane %v239_v43, 2 }
  0x9c   : > { %v247_v51 = vrot.slane %v246_v44, 2  ;;  %v254_v52 = vrot.slane %v253_v45, 2  ;;  %v261_v53 = vrot.slane %v260_v46, 2 }
  0x9d   : > { %v234_v54 = vadd.f32 %v233_v49, %v232_v42  ;;  %v241_v55 = vadd.f32 %v240_v50, %v239_v43 }
  0x9e   : > { %v248_v56 = vadd.f32 %v247_v51, %v246_v44  ;;  %v255_v57 = vadd.f32 %v254_v52, %v253_v45  ;;  %v262_v58 = vadd.f32 %v261_v53, %v260_v46 }
  0x9f   : > { %v235_v60 = vrot.slane %v234_v54, 1  ;;  %v242_v61 = vrot.slane %v241_v55, 1 }
  0xa0   : > { %v249_v62 = vrot.slane %v248_v56, 1  ;;  %v256_v63 = vrot.slane %v255_v57, 1  ;;  %v263_v0 = vrot.slane %v262_v58, 1 }
  0xa1   : > { %v236_v1 = vadd.f32 %v235_v60, %v234_v54  ;;  %v243_v2 = vadd.f32 %v242_v61, %v241_v55 }
  0xa2   : > { %v250_v3 = vadd.f32 %v249_v62, %v248_v56  ;;  %v257_v4 = vadd.f32 %v256_v63, %v255_v57  ;;  %v264_v7 = vadd.f32 %v263_v0, %v262_v58 }
  0xa3   : > { %v270_v9 = vcombine.low %v236_v1, %v243_v2 }
  0xa4   : > { %v271_v10 = vcombine.low %v250_v3, %v257_v4  ;;  %v292_v13 = vrot.slane %v264_v7, %v277_v8 }
  0xa5   : > { %v278_v11 = vrot.slane %v270_v9, %v277_v8 }
  0xa6   : > { %v285_v12 = vrot.slane %v271_v10, %v277_v8  ;;  %v307_v16 = vrot.slane %v292_v13, %v277_v8 }
  0xa8   : > { %v293_v14 = vcombine.low %v278_v11, %v285_v12 }
  0xaa   : > { %v300_v15 = vrot.slane %v293_v14, %v277_v8 }
  0xac   : > { %v308_v17 = vcombine.low %v300_v15, %v307_v16 }
  0xae   : > { %314 = vst.msk [vmem:[%s162_s17] sm:$0x1f] %vm312_vm10, %v308_v17 }
  0xaf   : > { %451 = shalt.err (!%p448_p3)
}
  0xb0   : > { %s452_s30 = scalar_lea.hbm %s604_s25, 80  ;;  %s456_s6 = scalar_lea.hbm %s649_s3, 160 }
  0xb1   : > { %p453_p4 = scmp.ne.s32.totalorder %s604_s25, %s452_s30  ;;  %p457_p9 = scmp.lt.u32.totalorder %s604_s25, %s649_s3 }
  0xb2   : > { %p458_p10 = scmp.lt.u32.totalorder %s456_s6, %s452_s30  ;;  %p460_p12 = scmp.lt.u32.totalorder %s452_s30, %s604_s25 }
  0xb3   : > { %p454_p7 = pnand %p453_p4, %p563_p5 }
  0xb4   : > { %p459_p11 = por %p458_p10, %p457_p9 }
  0xb5   : > { %p455_p8 = pneg %p454_p7 }
  0xb6   : > { %p461_p13 = por %p460_p12, %p459_p11 }
  0xb8   : > { %p462_p0 = pnand %p461_p13, %p455_p8 }
  0xba   : > { %465 = shalt.err (!%p462_p0)
}
  0xbb   : > { %395 = dma.vmem_to_hbm [thread:$0]  (%p563_p5), %s606_s19, 80, %s604_s25, %s316_s26  }
  0xbc PF: > { %p401_p1 = scmp.ge.s32.totalorder %s500_s15, 2  ;;  %s342_s9 = sand.u32 1, %s488_s12  }
  0xbd   : > { %s343_s10 = scalar_lea.sflag [#allocation3], %s342_s9 }
  0xbe   : > { %p398_p2 = pnand %p401_p1, %p567_p6 }
  0xc0   : > { %483 = dma.done.wait (!%p398_p2), %s343_s10, 80  }
  0xc1   : > { %485 = vsyncadd (!%p398_p2), %s343_s10, 4294967216  ;;  %p13_p3 = scmp.ge.s32.totalorder %s550_s18, 4   ;;  %s652_s12 = smov %s492_s13 }
  0xc2   : > { %s653_s13 = smov %s496_s14  ;;  %s654_s14 = smov %s561_s21 }
  0xc3   : > { %s655_s15 = smov %s550_s18  ;;  %15 = sbr.rel (!%p13_p3) target bundleno = 3 (0x3), region = 67 }
  0xca   :  { %348 = vsyncpa [#allocation3], 1 }
  0xcb   :  { %350 = vsyncpa [#allocation3 + $0x1], 1 }

</bundles_post_ra>
